<compile_context>
chip_gen: v6e
topology: v6e:2x2x1
jax: 0.10.0
libtpu: 0.0.40
codegen_flags: <defaults>
</compile_context>

<pallas_src>
import math
import functools

import jax
import jax.numpy as jnp
from jax.experimental import pallas as pl
from jax.experimental.pallas import tpu as pltpu

MIN_LOG_STD = -6.0
MAX_LOG_STD = 0.0
LOG_2PI = math.log(2.0 * math.pi)


def _mlp_cont_kernel(action_range, n_hidden, act_dim,
                     obs_ref, w_ref, small_ref, eps_ref, out_ref):
    # obs_ref  : (Bblk, W)      zero-padded obs
    # w_ref    : (L, W, W)      stacked zero-padded weights (hidden..., mu), L = n_hidden+1
    # small_ref: (L+1, W)       rows: hidden biases..., bmu, log_std_logits (zero-padded)
    # eps_ref  : (Bblk, W)      zero-padded standard-normal noise
    # out_ref  : (Bblk, W)      lanes [0, A) -> action, lane A -> logp, rest 0
    x = obs_ref[...]
    for i in range(n_hidden):
        x = jnp.dot(x, w_ref[i], preferred_element_type=jnp.float32) \
            + small_ref[i:i + 1, :]
        x = jnp.maximum(x, 0.0)                                  # ReLU (FCBody gate)

    mu = jnp.dot(x, w_ref[n_hidden], preferred_element_type=jnp.float32) \
         + small_ref[n_hidden:n_hidden + 1, :]
    mu = jnp.tanh(mu) * action_range                             # padded lanes stay 0

    logits = small_ref[n_hidden + 1:n_hidden + 2, :]             # (1, W)
    log_std = MIN_LOG_STD + jax.nn.sigmoid(logits) * (MAX_LOG_STD - MIN_LOG_STD)
    std = jnp.exp(log_std)

    eps = eps_ref[...]
    action = mu + std * eps                                      # rsample; padded lanes 0

    # Normal(mu, std).log_prob(action).sum(-1):
    #   z = (action - mu)/std == eps exactly by construction, so
    #   logp = -0.5*sum(eps^2) - sum(log_std) - 0.5*A*log(2*pi)
    lane_row = jax.lax.broadcasted_iota(jnp.int32, log_std.shape, 1)
    sum_log_std = jnp.sum(jnp.where(lane_row < act_dim, log_std, 0.0),
                          axis=-1, keepdims=True)                # (1, 1)
    quad = jnp.sum(eps * eps, axis=-1, keepdims=True)            # (Bblk, 1); pad lanes are 0
    logp = -0.5 * quad - sum_log_std - 0.5 * act_dim * LOG_2PI   # (Bblk, 1)

    lane = jax.lax.broadcasted_iota(jnp.int32, out_ref.shape, 1)
    out_ref[...] = jnp.where(lane == act_dim, logp, action)      # one lane-dense store


def mlp_cont_forward(obs, params, eps, action_range=1.0):
    """MLPCont forward in a single Pallas TPU kernel.

    obs: (B, obs_dim) float32
    params: {'hidden': [(W, b), ...], 'mu': (W, b), 'log_std_logits': (A,)}
            weights stored (in_features, out_features) so the kernel does x @ W + b.
    eps:  (B, act_dim) standard-normal noise (zeros => deterministic action)
    returns: (pi_action (B, A), logp_pi (B,))
    """
    B, obs_dim = obs.shape
    act_dim = params["mu"][0].shape[1]
    n_hidden = len(params["hidden"])
    L = n_hidden + 1

    dims = [obs_dim] + [w.shape[1] for (w, _) in params["hidden"]] + [act_dim]
    W = 128 * pl.cdiv(max(dims), 128)
    if act_dim == W:                 # need a spare lane for logp
        W += 128

    def pad_mat(m):
        return jnp.pad(m.astype(jnp.float32),
                       ((0, W - m.shape[0]), (0, W - m.shape[1])))

    def pad_row(v):
        return jnp.pad(v.astype(jnp.float32), (0, W - v.shape[0]))

    w_stack = jnp.stack([pad_mat(w) for (w, _) in params["hidden"]]
                        + [pad_mat(params["mu"][0])])                    # (L, W, W)
    small = jnp.stack([pad_row(b) for (_, b) in params["hidden"]]
                      + [pad_row(params["mu"][1]),
                         pad_row(params["log_std_logits"])])             # (L+1, W)
    obs_p = jnp.pad(obs.astype(jnp.float32), ((0, 0), (0, W - obs_dim)))  # (B, W)
    eps_p = jnp.pad(eps.astype(jnp.float32), ((0, 0), (0, W - act_dim)))  # (B, W)

    # Batch tiling: single block for small B, 128/256-row parallel tiles for large B
    # (shards across both v7x TensorCores via dimension_semantics=("parallel",)).
    if B > 256 and B % 256 == 0:
        block_b = 256
    elif B > 128 and B % 128 == 0:
        block_b = 128
    else:
        block_b = B
    grid = (B // block_b,)

    kernel = functools.partial(_mlp_cont_kernel, float(action_range), n_hidden, act_dim)

    out = pl.pallas_call(
        kernel,
        out_shape=jax.ShapeDtypeStruct((B, W), jnp.float32),
        grid_spec=pltpu.PrefetchScalarGridSpec(
            num_scalar_prefetch=0,
            grid=grid,
            in_specs=[
                pl.BlockSpec((block_b, W), lambda b: (b, 0)),    # obs (batch-tiled)
                pl.BlockSpec((L, W, W), lambda b: (0, 0, 0)),    # weights (resident)
                pl.BlockSpec((L + 1, W), lambda b: (0, 0)),      # biases + logits (resident)
                pl.BlockSpec((block_b, W), lambda b: (b, 0)),    # eps (batch-tiled)
            ],
            out_specs=pl.BlockSpec((block_b, W), lambda b: (b, 0)),
        ),
        compiler_params=pltpu.CompilerParams(dimension_semantics=("parallel",)),
    )(obs_p, w_stack, small, eps_p)

    return out[:, :act_dim], out[:, act_dim]


def _xavier_uniform(key, fan_in, fan_out):
    bound = math.sqrt(6.0 / (fan_in + fan_out))
    return jax.random.uniform(key, (fan_in, fan_out), jnp.float32, -bound, bound)


def init_params(key, obs_dim, act_dim, hidden_sizes):
    params = {"hidden": []}
    dims = [obs_dim] + list(hidden_sizes)
    for i in range(len(hidden_sizes)):
        key, wk = jax.random.split(key)
        w = _xavier_uniform(wk, dims[i], dims[i + 1])
        b = jnp.zeros((dims[i + 1],), jnp.float32)
        params["hidden"].append((w, b))
    key, wk = jax.random.split(key)
    body_out = obs_dim if len(hidden_sizes) == 0 else hidden_sizes[-1]
    params["mu"] = (_xavier_uniform(wk, body_out, act_dim),
                    jnp.zeros((act_dim,), jnp.float32))
    params["log_std_logits"] = jnp.zeros((act_dim,), jnp.float32)   # nn.Parameter(zeros)
    return params


def ref_forward(obs, params, eps, action_range=1.0):
    """Pure-JAX reference mirroring the torch module (full Normal.log_prob math)."""
    x = obs
    for (w, b) in params["hidden"]:
        x = jnp.maximum(x @ w + b, 0.0)
    wmu, bmu = params["mu"]
    mu = jnp.tanh(x @ wmu + bmu) * action_range
    log_std = MIN_LOG_STD + jax.nn.sigmoid(params["log_std_logits"]) * (MAX_LOG_STD - MIN_LOG_STD)
    std = jnp.exp(log_std)
    action = mu + std * eps
    z = (action - mu) / std
    logp = -0.5 * z * z - log_std - 0.5 * LOG_2PI
    return action, jnp.sum(logp, axis=-1)


if __name__ == "__main__":
    key = jax.random.PRNGKey(0)
    batch, obs_dim, act_dim = 8, 16, 4
    hidden_sizes = [32, 32]

    key, pk, ok, ek = jax.random.split(key, 4)
    params = init_params(pk, obs_dim, act_dim, hidden_sizes)
    obs = jax.random.normal(ok, (batch, obs_dim), jnp.float32)
    eps = jax.random.normal(ek, (batch, act_dim), jnp.float32)   # rsample noise

    pi_action, logp_pi = mlp_cont_forward(obs, params, eps, action_range=1.0)
    jax.block_until_ready((pi_action, logp_pi))

    ref_a, ref_l = ref_forward(obs, params, eps)
    assert jnp.allclose(pi_action, ref_a, atol=1e-5), "action mismatch"
    # logp uses the exact identity (action-mu)/std == eps; reference recomputes the
    # division, so allow a slightly looser tolerance for fp-rounding differences.
    assert jnp.allclose(logp_pi, ref_l, atol=1e-4), "logp mismatch"

    print("KERNEL_OK")
</pallas_src>

<mosaic_0001>
module attributes {stable_mosaic.version = 11 : i64} {
  func.func @_mlp_cont_kernel(%arg0: i32, %arg1: memref<8x128xf32, #tpu.memory_space<vmem>>, %arg2: memref<3x128x128xf32, #tpu.memory_space<vmem>>, %arg3: memref<4x128xf32, #tpu.memory_space<vmem>>, %arg4: memref<8x128xf32, #tpu.memory_space<vmem>>, %arg5: memref<8x128xf32, #tpu.memory_space<vmem>>) attributes {dimension_semantics = [#tpu.dimension_semantics<parallel>], iteration_bounds = array<i64: 1>, scalar_prefetch = 0 : i64, scratch_operands = 0 : i64, tpu.core_type = #tpu.core_type<tc>, window_params = [{transform_indices = @transform_0, window_bounds = array<i64: 8, 128>}, {pipeline_mode = #tpu.pipeline_mode<synchronous>, transform_indices = @transform_1, window_bounds = array<i64: 3, 128, 128>}, {pipeline_mode = #tpu.pipeline_mode<synchronous>, transform_indices = @transform_2, window_bounds = array<i64: 4, 128>}, {transform_indices = @transform_3, window_bounds = array<i64: 8, 128>}, {transform_indices = @transform_4, window_bounds = array<i64: 8, 128>}]} {
    %c0 = arith.constant 0 : index
    %c0_0 = arith.constant 0 : index
    %0 = vector.load %arg1[%c0, %c0_0] : memref<8x128xf32, #tpu.memory_space<vmem>>, vector<8x128xf32>
    %c0_1 = arith.constant 0 : index
    %c0_2 = arith.constant 0 : index
    %c0_3 = arith.constant 0 : index
    %1 = vector.load %arg2[%c0_1, %c0_2, %c0_3] : memref<3x128x128xf32, #tpu.memory_space<vmem>>, vector<1x128x128xf32>
    %2 = vector.shape_cast %1 : vector<1x128x128xf32> to vector<128x128xf32>
    %cst = arith.constant dense<0.000000e+00> : vector<8x128xf32>
    %3 = tpu.matmul %0, %2, %cst {dimension_numbers = #tpu.dot_dimension_numbers<[1], [0], [0], [1], [0, 0, 1, 1], [], []>} : vector<8x128xf32>, vector<128x128xf32>, vector<8x128xf32> -> vector<8x128xf32>
    %c0_4 = arith.constant 0 : index
    %c0_5 = arith.constant 0 : index
    %4 = vector.load %arg3[%c0_4, %c0_5] : memref<4x128xf32, #tpu.memory_space<vmem>>, vector<1x128xf32>
    %5 = vector.broadcast %4 : vector<1x128xf32> to vector<8x128xf32>
    %6 = arith.addf %3, %5 : vector<8x128xf32>
    %cst_6 = arith.constant 0.000000e+00 : f32
    %7 = vector.broadcast %cst_6 : f32 to vector<8x128xf32>
    %8 = arith.maximumf %6, %7 : vector<8x128xf32>
    %c1 = arith.constant 1 : index
    %c0_7 = arith.constant 0 : index
    %c0_8 = arith.constant 0 : index
    %9 = vector.load %arg2[%c1, %c0_7, %c0_8] : memref<3x128x128xf32, #tpu.memory_space<vmem>>, vector<1x128x128xf32>
    %10 = vector.shape_cast %9 : vector<1x128x128xf32> to vector<128x128xf32>
    %cst_9 = arith.constant dense<0.000000e+00> : vector<8x128xf32>
    %11 = tpu.matmul %8, %10, %cst_9 {dimension_numbers = #tpu.dot_dimension_numbers<[1], [0], [0], [1], [0, 0, 1, 1], [], []>} : vector<8x128xf32>, vector<128x128xf32>, vector<8x128xf32> -> vector<8x128xf32>
    %c1_10 = arith.constant 1 : index
    %c0_11 = arith.constant 0 : index
    %12 = vector.load %arg3[%c1_10, %c0_11] : memref<4x128xf32, #tpu.memory_space<vmem>>, vector<1x128xf32>
    %13 = vector.broadcast %12 : vector<1x128xf32> to vector<8x128xf32>
    %14 = arith.addf %11, %13 : vector<8x128xf32>
    %cst_12 = arith.constant 0.000000e+00 : f32
    %15 = vector.broadcast %cst_12 : f32 to vector<8x128xf32>
    %16 = arith.maximumf %14, %15 : vector<8x128xf32>
    %c2 = arith.constant 2 : index
    %c0_13 = arith.constant 0 : index
    %c0_14 = arith.constant 0 : index
    %17 = vector.load %arg2[%c2, %c0_13, %c0_14] : memref<3x128x128xf32, #tpu.memory_space<vmem>>, vector<1x128x128xf32>
    %18 = vector.shape_cast %17 : vector<1x128x128xf32> to vector<128x128xf32>
    %cst_15 = arith.constant dense<0.000000e+00> : vector<8x128xf32>
    %19 = tpu.matmul %16, %18, %cst_15 {dimension_numbers = #tpu.dot_dimension_numbers<[1], [0], [0], [1], [0, 0, 1, 1], [], []>} : vector<8x128xf32>, vector<128x128xf32>, vector<8x128xf32> -> vector<8x128xf32>
    %c2_16 = arith.constant 2 : index
    %c0_17 = arith.constant 0 : index
    %20 = vector.load %arg3[%c2_16, %c0_17] : memref<4x128xf32, #tpu.memory_space<vmem>>, vector<1x128xf32>
    %21 = vector.broadcast %20 : vector<1x128xf32> to vector<8x128xf32>
    %22 = arith.addf %19, %21 : vector<8x128xf32>
    %23 = math.tanh %22 : vector<8x128xf32>
    %cst_18 = arith.constant 1.000000e+00 : f32
    %24 = vector.broadcast %cst_18 : f32 to vector<8x128xf32>
    %25 = arith.mulf %23, %24 : vector<8x128xf32>
    %c3 = arith.constant 3 : index
    %c0_19 = arith.constant 0 : index
    %26 = vector.load %arg3[%c3, %c0_19] : memref<4x128xf32, #tpu.memory_space<vmem>>, vector<1x128xf32>
    %27 = arith.negf %26 : vector<1x128xf32>
    %28 = math.exp %27 : vector<1x128xf32>
    %cst_20 = arith.constant 1.000000e+00 : f32
    %29 = vector.broadcast %cst_20 : f32 to vector<1x128xf32>
    %30 = arith.addf %29, %28 : vector<1x128xf32>
    %31 = arith.divf %29, %30 : vector<1x128xf32>
    %cst_21 = arith.constant 6.000000e+00 : f32
    %32 = vector.broadcast %cst_21 : f32 to vector<1x128xf32>
    %33 = arith.mulf %31, %32 : vector<1x128xf32>
    %cst_22 = arith.constant -6.000000e+00 : f32
    %34 = vector.broadcast %cst_22 : f32 to vector<1x128xf32>
    %35 = arith.addf %34, %33 : vector<1x128xf32>
    %36 = math.exp %35 : vector<1x128xf32>
    %c0_23 = arith.constant 0 : index
    %c0_24 = arith.constant 0 : index
    %37 = vector.load %arg4[%c0_23, %c0_24] : memref<8x128xf32, #tpu.memory_space<vmem>>, vector<8x128xf32>
    %38 = vector.broadcast %36 : vector<1x128xf32> to vector<8x128xf32>
    %39 = arith.mulf %38, %37 : vector<8x128xf32>
    %40 = arith.addf %25, %39 : vector<8x128xf32>
    %41 = tpu.iota {dimensions = array<i32: 1>} : vector<1x128xi32>
    %c4_i32 = arith.constant 4 : i32
    %42 = vector.broadcast %c4_i32 : i32 to vector<1x128xi32>
    %43 = arith.cmpi slt, %41, %42 : vector<1x128xi32>
    %cst_25 = arith.constant 0.000000e+00 : f32
    %44 = vector.broadcast %cst_25 : f32 to vector<1x128xf32>
    %45 = arith.select %43, %35, %44 : vector<1x128xi1>, vector<1x128xf32>
    %cst_26 = arith.constant dense<0.000000e+00> : vector<1xf32>
    %46 = vector.multi_reduction <add>, %45, %cst_26 [1] : vector<1x128xf32> to vector<1xf32>
    %47 = vector.shape_cast %46 : vector<1xf32> to vector<1x1xf32>
    %48 = arith.mulf %37, %37 : vector<8x128xf32>
    %cst_27 = arith.constant dense<0.000000e+00> : vector<8xf32>
    %49 = vector.multi_reduction <add>, %48, %cst_27 [1] : vector<8x128xf32> to vector<8xf32>
    %50 = vector.shape_cast %49 : vector<8xf32> to vector<8x1xf32>
    %cst_28 = arith.constant -5.000000e-01 : f32
    %51 = vector.broadcast %cst_28 : f32 to vector<8x1xf32>
    %52 = arith.mulf %51, %50 : vector<8x1xf32>
    %53 = vector.broadcast %47 : vector<1x1xf32> to vector<8x1xf32>
    %54 = arith.subf %52, %53 : vector<8x1xf32>
    %cst_29 = arith.constant 3.67575407 : f32
    %55 = vector.broadcast %cst_29 : f32 to vector<8x1xf32>
    %56 = arith.subf %54, %55 : vector<8x1xf32>
    %57 = tpu.iota {dimensions = array<i32: 1>} : vector<8x128xi32>
    %c4_i32_30 = arith.constant 4 : i32
    %58 = vector.broadcast %c4_i32_30 : i32 to vector<8x128xi32>
    %59 = arith.cmpi eq, %57, %58 : vector<8x128xi32>
    %60 = vector.shape_cast %56 : vector<8x1xf32> to vector<8x1xf32>
    %61 = vector.broadcast %60 : vector<8x1xf32> to vector<8x128xf32>
    %62 = arith.select %59, %61, %40 : vector<8x128xi1>, vector<8x128xf32>
    %c0_31 = arith.constant 0 : index
    %c0_32 = arith.constant 0 : index
    %63 = vector.load %arg5[%c0_31, %c0_32] : memref<8x128xf32, #tpu.memory_space<vmem>>, vector<8x128xf32>
    tpu.vector_store %arg5[%c0_31, %c0_32], %62 {strides = array<i32>} : memref<8x128xf32, #tpu.memory_space<vmem>>, vector<8x128xf32>,
    return
  }
  func.func @transform_0(%arg0: i32) -> (i32, i32) {
    %c0_i32 = arith.constant 0 : i32
    %c0_i32_0 = arith.constant 0 : i32
    return %arg0, %c0_i32 : i32, i32
  }
  func.func @transform_1(%arg0: i32) -> (i32, i32, i32) {
    %c0_i32 = arith.constant 0 : i32
    %c0_i32_0 = arith.constant 0 : i32
    %c0_i32_1 = arith.constant 0 : i32
    %c0_i32_2 = arith.constant 0 : i32
    return %c0_i32, %c0_i32_0, %c0_i32_1 : i32, i32, i32
  }
  func.func @transform_2(%arg0: i32) -> (i32, i32) {
    %c0_i32 = arith.constant 0 : i32
    %c0_i32_0 = arith.constant 0 : i32
    %c0_i32_1 = arith.constant 0 : i32
    return %c0_i32, %c0_i32_0 : i32, i32
  }
  func.func @transform_3(%arg0: i32) -> (i32, i32) {
    %c0_i32 = arith.constant 0 : i32
    %c0_i32_0 = arith.constant 0 : i32
    return %arg0, %c0_i32 : i32, i32
  }
  func.func @transform_4(%arg0: i32) -> (i32, i32) {
    %c0_i32 = arith.constant 0 : i32
    %c0_i32_0 = arith.constant 0 : i32
    return %arg0, %c0_i32 : i32, i32
  }
}

</mosaic_0001>

<bundles_post_ra>
// kernel: tpu_custom_call.1
= control target key start
LH: loop header
LB: loop body
LE: loop exit
PB: predicated region body
PF: predicated region fallthrough
CT: control target
= control target key end

     0   :  { %9 = vsyncpa [#allocation3], 0  ;;  %s791_s0 = inlined_call_operand.hbm [shape: f32[8,128], index: 0, kind: input, shape index: {}]   ;;  %s792_s1 = inlined_call_operand.hbm [shape: f32[3,128,128], index: 1, kind: input, shape index: {}]   ;;  %s793_s2 = inlined_call_operand.hbm [shape: f32[4,128], index: 2, kind: input, shape index: {}]   ;;  %s794_s3 = inlined_call_operand.hbm [shape: f32[8,128], index: 3, kind: input, shape index: {}]   ;;  %s795_s4 = inlined_call_operand.hbm [shape: f32[8,128], index: 4, kind: output, shape index: {}]  }
   0x1   :  { %10 = vsyncpa [#allocation6], 0 }
   0x2   :  { %11 = vsyncpa [#allocation9], 0 }
   0x3   :  { %12 = vsyncpa [#allocation4], 0  ;;  %s688_s15 = smov [#allocation5]  }
   0x4   :  { %s28_s16 = sshll.u32 %s688_s15, 4  ;;  %s29_s16 = int_to_ptr.vmem [resolvable:$true] %s28_s16 }
   0x5   :  { %s588_s17 = scalar_lea.vmem %s29_s16, 6144  ;;  %p593_p1 = scmp.lt.s32.totalorder %s29_s16, %s29_s16 }
   0x6   :  { %p589_p0 = scmp.ne.s32.totalorder %s29_s16, %s588_s17  ;;  %p594_p2 = scmp.lt.s32.totalorder %s588_s17, %s588_s17 }
   0x8   :  { %p595_p3 = por %p594_p2, %p593_p1 }
   0xa   :  { %p596_p4 = pnand %p595_p3, %p589_p0 }
   0xc   :  { %599 = shalt.err (!%p596_p4)
}
   0xd   :  { %s689_s18 = smov 128   ;;  %s690_s19 = smov 8  }
   0xe   :  { %34 = dma.hbm_to_vmem [thread:$0]  %s792_s1, 6144, %s29_s16, [#allocation6], %s689_s18, %s689_s18, %s690_s19  }
   0xf   :  { %s691_s22 = smov [#allocation2]   ;;  %s692_s24 = smov [#allocation7]  }
  0x10   :  { %s19_s23 = sshll.u32 %s691_s22, 4  ;;  %s41_s25 = sshll.u32 %s692_s24, 4  ;;  %s20_s23 = int_to_ptr.vmem [resolvable:$true] %s19_s23  ;;  %s42_s25 = int_to_ptr.vmem [resolvable:$true] %s41_s25 }
  0x11   :  { %s608_s26 = scalar_lea.vmem %s20_s23, 128  ;;  %p613_p6 = scmp.lt.s32.totalorder %s20_s23, %s20_s23 }
  0x12   :  { %p609_p5 = scmp.ne.s32.totalorder %s20_s23, %s608_s26  ;;  %p614_p7 = scmp.lt.s32.totalorder %s608_s26, %s608_s26 }
  0x14   :  { %p615_p8 = por %p614_p7, %p613_p6 }
  0x16   :  { %p616_p9 = pnand %p615_p8, %p609_p5 }
  0x18   :  { %619 = shalt.err (!%p616_p9)
}
  0x19   :  { %22 = dma.hbm_to_vmem [thread:$0]  %s791_s0, 128, %s20_s23, [#allocation3]  }
  0x1a   :  { %s628_s29 = scalar_lea.vmem %s42_s25, 64  ;;  %p633_p11 = scmp.lt.s32.totalorder %s42_s25, %s42_s25 }
  0x1b   :  { %p629_p10 = scmp.ne.s32.totalorder %s42_s25, %s628_s29  ;;  %p634_p12 = scmp.lt.s32.totalorder %s628_s29, %s628_s29 }
  0x1d   :  { %p635_p13 = por %p634_p12, %p633_p11 }
  0x1f   :  { %p636_p0 = pnand %p635_p13, %p629_p10 }
  0x21   :  { %639 = shalt.err (!%p636_p0)
}
  0x22   :  { %44 = dma.hbm_to_vmem [thread:$0]  %s793_s2, 64, %s42_s25, [#allocation6]  }
  0x23   :  { %s693_s5 = smov [#allocation8]  }
  0x24   :  { %s51_s6 = sshll.u32 %s693_s5, 4  ;;  %s52_s6 = int_to_ptr.vmem [resolvable:$true] %s51_s6 }
  0x25   :  { %s648_s7 = scalar_lea.vmem %s52_s6, 128  ;;  %p653_p2 = scmp.lt.s32.totalorder %s52_s6, %s52_s6 }
  0x26   :  { %p649_p1 = scmp.ne.s32.totalorder %s52_s6, %s648_s7  ;;  %p654_p3 = scmp.lt.s32.totalorder %s648_s7, %s648_s7 }
  0x28   :  { %p655_p4 = por %p654_p3, %p653_p2 }
  0x2a   :  { %p656_p5 = pnand %p655_p4, %p649_p1 }
  0x2c   :  { %659 = shalt.err (!%p656_p5)
}
  0x2d   :  { %54 = dma.hbm_to_vmem [thread:$0]  %s794_s3, 128, %s52_s6, [#allocation9]  }
  0x2e   :  { %680 = dma.done.wait [#allocation3], 128  }
  0x2f   :  { %681 = vsyncadd [#allocation3], 4294967168 }
  0x30   :  { %682 = dma.done.wait [#allocation6], 6208  }
  0x31   :  { %683 = vsyncadd [#allocation6], 4294961088 }
  0x32   :  { %684 = dma.done.wait [#allocation9], 128  }
  0x33   :  { %685 = vsyncadd [#allocation9], 4294967168  ;;  %v694_v0 = vmov 0.0   ;;  %vm695_vm0 = vmmov 0   ;;  %v83_v1 = vld [vmem:[#allocation5 + $0x78] sm:$0xff]  ;;  %v82_v2 = vld [vmem:[#allocation5 + $0x70] sm:$0xff]  ;;  %v358_v59 = vlaneseq }
  0x34   :  { %458 = vmatprep.subr.mxu0 %v694_v0  ;;  %490 = vmatprep.mubr.msk.f32.mxu0 %vm695_vm0, %v694_v0  ;;  %v81_v3 = vld [vmem:[#allocation5 + $0x68] sm:$0xff]  ;;  %v80_v4 = vld [vmem:[#allocation5 + $0x60] sm:$0xff]  ;;  %v176_v5 = vld [vmem:[#allocation5 + $0xf8] sm:$0xff]  ;;  %vm368_vm2 = vcmask 1040384   ;;  %s696_s2 = smov [#allocation10]  }
  0x35   :  { %493 = vmatprep.subr.mxu1 %v694_v0  ;;  %525 = vmatprep.mubr.msk.f32.mxu1 %vm695_vm0, %v694_v0  ;;  %v79_v6 = vld [vmem:[#allocation5 + $0x58] sm:$0xff]  ;;  %v175_v7 = vld [vmem:[#allocation5 + $0xf0] sm:$0xff]  ;;  %v174_v8 = vld [vmem:[#allocation5 + $0xe8] sm:$0xff]  ;;  %v365_v60 = vand.u32 127, %v358_v59  ;;  %s391_s3 = sshll.u32 %s696_s2, 4  ;;  %s392_s3 = int_to_ptr.vmem [resolvable:$true] %s391_s3 }
  0x36   :  { %459 = vmatpush3.msra.mxu0 %v83_v1  ;;  %494 = vmatpush3.msra.mxu1 %v176_v5  ;;  %v78_v9 = vld [vmem:[#allocation5 + $0x50] sm:$0xff]  ;;  %v173_v10 = vld [vmem:[#allocation5 + $0xe0] sm:$0xff]  ;;  %v77_v11 = vld [vmem:[#allocation5 + $0x48] sm:$0xff]  ;;  %s660_s9 = scalar_lea.vmem %s392_s3, 128  ;;  %p665_p7 = scmp.lt.s32.totalorder %s392_s3, %s392_s3 }
  0x37   :  { %460 = vmatprep.subr.mxu0 %v694_v0  ;;  %495 = vmatprep.subr.mxu1 %v694_v0  ;;  %v172_v12 = vld [vmem:[#allocation5 + $0xd8] sm:$0xff]  ;;  %v76_v13 = vld [vmem:[#allocation5 + $0x40] sm:$0xff]  ;;  %v171_v14 = vld [vmem:[#allocation5 + $0xd0] sm:$0xff]  ;;  %vm366_vm1 = vcmp.lt.s32.totalorder %v365_v60, 4  ;;  %vm382_vm3 = vcmp.eq.s32.totalorder %v365_v60, 4  ;;  %p661_p6 = scmp.ne.s32.totalorder %s392_s3, %s660_s9  ;;  %p666_p8 = scmp.lt.s32.totalorder %s660_s9, %s660_s9 }
  0x38   :  { %461 = vmatpush3.msra.mxu0 %v82_v2  ;;  %496 = vmatpush3.msra.mxu1 %v175_v7  ;;  %v75_v15 = vld [vmem:[#allocation5 + $0x38] sm:$0xff]  ;;  %v170_v16 = vld [vmem:[#allocation5 + $0xc8] sm:$0xff]  ;;  %v74_v17 = vld [vmem:[#allocation5 + $0x30] sm:$0xff] }
  0x39   :  { %462 = vmatprep.subr.mxu0 %v694_v0  ;;  %497 = vmatprep.subr.mxu1 %v694_v0  ;;  %v169_v18 = vld [vmem:[#allocation5 + $0xc0] sm:$0xff]  ;;  %v73_v19 = vld [vmem:[#allocation5 + $0x28] sm:$0xff]  ;;  %v168_v20 = vld [vmem:[#allocation5 + $0xb8] sm:$0xff]  ;;  %p667_p9 = por %p666_p8, %p665_p7 }
  0x3a   :  { %463 = vmatpush3.msra.mxu0 %v81_v3  ;;  %498 = vmatpush3.msra.mxu1 %v174_v8  ;;  %v72_v21 = vld [vmem:[#allocation5 + $0x20] sm:$0xff]  ;;  %v167_v22 = vld [vmem:[#allocation5 + $0xb0] sm:$0xff]  ;;  %v71_v23 = vld [vmem:[#allocation5 + $0x18] sm:$0xff] }
  0x3b   :  { %464 = vmatprep.subr.mxu0 %v694_v0  ;;  %499 = vmatprep.subr.mxu1 %v694_v0  ;;  %v166_v24 = vld [vmem:[#allocation5 + $0xa8] sm:$0xff]  ;;  %v70_v25 = vld [vmem:[#allocation5 + $0x10] sm:$0xff]  ;;  %v165_v26 = vld [vmem:[#allocation5 + $0xa0] sm:$0xff]  ;;  %p668_p10 = pnand %p667_p9, %p661_p6 }
  0x3c   :  { %465 = vmatpush3.msra.mxu0 %v80_v4  ;;  %500 = vmatpush3.msra.mxu1 %v173_v10  ;;  %v69_v27 = vld [vmem:[#allocation5 + $0x8] sm:$0xff]  ;;  %v164_v28 = vld [vmem:[#allocation5 + $0x98] sm:$0xff]  ;;  %v68_v29 = vld [vmem:[#allocation5] sm:$0xff] }
  0x3d   :  { %466 = vmatprep.subr.mxu0 %v694_v0  ;;  %501 = vmatprep.subr.mxu1 %v694_v0  ;;  %v67_v30 = vld [vmem:[#allocation2] sm:$0xff]  ;;  %v163_v31 = vld [vmem:[#allocation5 + $0x90] sm:$0xff]  ;;  %v162_v32 = vld [vmem:[#allocation5 + $0x88] sm:$0xff] }
  0x3e   :  { %467 = vmatpush3.msra.mxu0 %v79_v6  ;;  %502 = vmatpush3.msra.mxu1 %v172_v12  ;;  %v161_v33 = vld [vmem:[#allocation5 + $0x80] sm:$0xff]  ;;  %v269_v34 = vld [vmem:[#allocation5 + $0x178] sm:$0xff]  ;;  %v268_v35 = vld [vmem:[#allocation5 + $0x170] sm:$0xff] }
  0x3f   :  { %468 = vmatprep.subr.mxu0 %v694_v0  ;;  %503 = vmatprep.subr.mxu1 %v694_v0  ;;  %v267_v36 = vld [vmem:[#allocation5 + $0x168] sm:$0xff]  ;;  %v266_v37 = vld [vmem:[#allocation5 + $0x160] sm:$0xff]  ;;  %v265_v38 = vld [vmem:[#allocation5 + $0x158] sm:$0xff] }
  0x40   :  { %469 = vmatpush3.msra.mxu0 %v78_v9  ;;  %504 = vmatpush3.msra.mxu1 %v171_v14  ;;  %v264_v39 = vld [vmem:[#allocation5 + $0x150] sm:$0xff]  ;;  %v263_v40 = vld [vmem:[#allocation5 + $0x148] sm:$0xff]  ;;  %v262_v41 = vld [vmem:[#allocation5 + $0x140] sm:$0xff]  ;;  %v359_v14 = vshrl.u32 %v358_v59, 7 }
  0x41   :  { %470 = vmatprep.subr.mxu0 %v694_v0  ;;  %505 = vmatprep.subr.mxu1 %v694_v0  ;;  %v261_v42 = vld [vmem:[#allocation5 + $0x138] sm:$0xff]  ;;  %v260_v43 = vld [vmem:[#allocation5 + $0x130] sm:$0xff]  ;;  %v259_v44 = vld [vmem:[#allocation5 + $0x128] sm:$0xff] }
  0x42   :  { %471 = vmatpush3.msra.mxu0 %v77_v11  ;;  %506 = vmatpush3.msra.mxu1 %v170_v16  ;;  %v258_v45 = vld [vmem:[#allocation5 + $0x120] sm:$0xff]  ;;  %v257_v46 = vld [vmem:[#allocation5 + $0x118] sm:$0xff]  ;;  %v256_v52 = vld [vmem:[#allocation5 + $0x110] sm:$0xff]  ;;  %v360_v16 = vsub.s32 0, %v359_v14 }
  0x43   :  { %472 = vmatprep.subr.mxu0 %v694_v0  ;;  %507 = vmatprep.subr.mxu1 %v694_v0  ;;  %v402_v47 = vld [vmem:[#allocation7] ss:$0 sm:$0xff]  ;;  %v255_v53 = vld [vmem:[#allocation5 + $0x108] sm:$0xff]  ;;  %v346_v55 = vld [vmem:[#allocation7 + $0x3] sm:$0x1] }
  0x44   :  { %473 = vmatpush3.msra.mxu0 %v76_v13  ;;  %508 = vmatpush3.msra.mxu1 %v169_v18  ;;  %v254_v54 = vld [vmem:[#allocation5 + $0x100] sm:$0xff]  ;;  %v405_v56 = vmul.f32 -1.442695, %v346_v55 }
  0x45   :  { %474 = vmatprep.subr.mxu0 %v694_v0  ;;  %509 = vmatprep.subr.mxu1 %v694_v0  ;;  %v357_v1 = vld [vmem:[#allocation8] sm:$0xff]  ;;  %v403_v4 = vld [vmem:[#allocation7 + $0x1] ss:$0 sm:$0xff]  ;;  %v404_v10 = vld [vmem:[#allocation7 + $0x2] ss:$0 sm:$0xff] }
  0x46   :  { %475 = vmatpush3.msra.mxu0 %v75_v15  ;;  %510 = vmatpush3.msra.mxu1 %v168_v20  ;;  %572 = vpow2.f32 %v405_v56 }
  0x47   :  { %476 = vmatprep.subr.mxu0 %v694_v0  ;;  %511 = vmatprep.subr.mxu1 %v694_v0 }
  0x48   :  { %477 = vmatpush3.msra.mxu0 %v74_v17  ;;  %512 = vmatpush3.msra.mxu1 %v167_v22 }
  0x49   :  { %478 = vmatprep.subr.mxu0 %v694_v0  ;;  %513 = vmatprep.subr.mxu1 %v694_v0 }
  0x4a   :  { %479 = vmatpush3.msra.mxu0 %v73_v19  ;;  %514 = vmatpush3.msra.mxu1 %v166_v24 }
  0x4b   :  { %480 = vmatprep.subr.mxu0 %v694_v0  ;;  %515 = vmatprep.subr.mxu1 %v694_v0 }
  0x4c   :  { %481 = vmatpush3.msra.mxu0 %v72_v21  ;;  %516 = vmatpush3.msra.mxu1 %v165_v26 }
  0x4d   :  { %482 = vmatprep.subr.mxu0 %v694_v0  ;;  %517 = vmatprep.subr.mxu1 %v694_v0 }
  0x4e   :  { %483 = vmatpush3.msra.mxu0 %v71_v23  ;;  %518 = vmatpush3.msra.mxu1 %v164_v28 }
  0x4f   :  { %484 = vmatprep.subr.mxu0 %v694_v0  ;;  %519 = vmatprep.subr.mxu1 %v694_v0 }
  0x50   :  { %485 = vmatpush3.msra.mxu0 %v70_v25  ;;  %520 = vmatpush3.msra.mxu1 %v163_v31 }
  0x51   :  { %486 = vmatprep.subr.mxu0 %v694_v0  ;;  %521 = vmatprep.subr.mxu1 %v694_v0 }
  0x52   :  { %487 = vmatpush3.msra.mxu0 %v69_v27  ;;  %522 = vmatpush3.msra.mxu1 %v162_v32 }
  0x53   :  { %488 = vmatprep.subr.mxu0 %v694_v0  ;;  %523 = vmatprep.subr.mxu1 %v694_v0  ;;  %v573_v57 = vpop.eup %572 }
  0x54   :  { %489 = vmatpush3.msra.mxu0 %v68_v29  ;;  %524 = vmatpush3.msra.mxu1 %v161_v33  ;;  %v350_v58 = vadd.f32 1.0, %v573_v57 }
  0x55   :  { %491 = vmatmul.mubr.f32.vlgmr.msra.gmra.mxu0 %v67_v30  ;;  %528 = vmatprep.subr.mxu0 %v694_v0 }
  0x56   :  { %560 = vmatprep.mubr.msk.f32.mxu0 %vm695_vm0, %v694_v0  ;;  %529 = vmatpush3.msra.mxu0 %v269_v34  ;;  %574 = vrcp.f32 %v350_v58 }
  0x57   :  { %530 = vmatprep.subr.mxu0 %v694_v0 }
  0x58   :  { %531 = vmatpush3.msra.mxu0 %v268_v35 }
  0x59   :  { %532 = vmatprep.subr.mxu0 %v694_v0 }
  0x5a   :  { %533 = vmatpush3.msra.mxu0 %v267_v36 }
  0x5b   :  { %534 = vmatprep.subr.mxu0 %v694_v0 }
  0x5c   :  { %535 = vmatpush3.msra.mxu0 %v266_v37 }
  0x5d   :  { %536 = vmatprep.subr.mxu0 %v694_v0 }
  0x5e   :  { %537 = vmatpush3.msra.mxu0 %v265_v38 }
  0x5f   :  { %538 = vmatprep.subr.mxu0 %v694_v0 }
  0x60   :  { %539 = vmatpush3.msra.mxu0 %v264_v39 }
  0x61   :  { %540 = vmatprep.subr.mxu0 %v694_v0 }
  0x62   :  { %541 = vmatpush3.msra.mxu0 %v263_v40 }
  0x63   :  { %542 = vmatprep.subr.mxu0 %v694_v0  ;;  %v575_v61 = vpop.eup %574 }
  0x64   :  { %543 = vmatpush3.msra.mxu0 %v262_v41  ;;  %v353_v62 = vmul.f32 6.0, %v575_v61 }
  0x65   :  { %544 = vmatprep.subr.mxu0 %v694_v0 }
  0x66   :  { %545 = vmatpush3.msra.mxu0 %v261_v42  ;;  %v354_v63 = vadd.f32 -6.0, %v353_v62 }
  0x67   :  { %546 = vmatprep.subr.mxu0 %v694_v0 }
  0x68   :  { %547 = vmatpush3.msra.mxu0 %v260_v43  ;;  %v367_v2 = vsel %vm366_vm1, %v354_v63, 0.0  ;;  %v355_v9 = vmul.f32 1.442695, %v354_v63 }
  0x69   :  { %548 = vmatprep.subr.mxu0 %v694_v0  ;;  %v369_v3 = vsel %vm368_vm2, %v367_v2, 0.0 }
  0x6a   :  { %549 = vmatpush3.msra.mxu0 %v259_v44  ;;  %370 = vadd.xlane.f32.xlu0 %v369_v3  ;;  %576 = vpow2.f32 %v355_v9 }
  0x6b   :  { %550 = vmatprep.subr.mxu0 %v694_v0 }
  0x6c   :  { %551 = vmatpush3.msra.mxu0 %v258_v45 }
  0x6d   :  { %552 = vmatprep.subr.mxu0 %v694_v0 }
  0x6e   :  { %553 = vmatpush3.msra.mxu0 %v257_v46 }
  0x6f   :  { %554 = vmatprep.subr.mxu0 %v694_v0 }
  0x70   :  { %555 = vmatpush3.msra.mxu0 %v256_v52 }
  0x71   :  { %556 = vmatprep.subr.mxu0 %v694_v0 }
  0x72   :  { %557 = vmatpush3.msra.mxu0 %v255_v53 }
  0x73   :  { %558 = vmatprep.subr.mxu0 %v694_v0  ;;  %v372_v0 = vmul.f32 %v357_v1, %v357_v1 }
  0x74   :  { %559 = vmatpush3.msra.mxu0 %v254_v54 }
  0x75   :  { %373 = vadd.xlane.f32.xlu0 %v372_v0 }
  0x77   :  { %v577_v17 = vpop.eup %576 }
  0x78   :  { %v361_v19 = vrot.slane %v577_v17, %v360_v16 }
  0x7a   :  { %v362_v22 = vmul.f32 %v361_v19, %v357_v1 }
  0xf3   :  { %v371_v12 = vpop.xlane.xlu0 %370 }
  0xf4   :  { %v379_v20 = vrot.slane %v371_v12, %v360_v16 }
  0xfe   :  { %v374_v18 = vpop.xlane.xlu0 %373 }
  0xff   :  { %v375_v21 = vmul.f32 -0.5, %v374_v18 }
 0x101   :  { %v380_v23 = vsub.f32 %v375_v21, %v379_v20 }
 0x103   :  { %v406_v25 = vadd.f32 -3.675754, %v380_v23 }
 0x115   :  { %v155_v48 = vpop.f32.mrf.mxu0 }
 0x116   :  { %v156_v49 = vadd.f32 %v402_v47, %v155_v48 }
 0x117   :  { %v492_v50 = vpop.f32.mrf.mxu0 }
 0x118   :  { %v159_v51 = vmax.f32 %v156_v49, 0.0 }
 0x11a   :  { %526 = vmatmul.mubr.f32.vlgmr.msra.gmra.mxu1 %v159_v51 }
 0x1da   :  { %v248_v5 = vpop.f32.mrf.mxu1 }
 0x1db   :  { %v249_v6 = vadd.f32 %v403_v4, %v248_v5 }
 0x1dc   :  { %v527_v7 = vpop.f32.mrf.mxu1 }
 0x1dd   :  { %v252_v8 = vmax.f32 %v249_v6, 0.0 }
 0x1df   :  { %561 = vmatmul.mubr.f32.vlgmr.msra.gmra.mxu0 %v252_v8 }
 0x29f   :  { %v341_v11 = vpop.f32.mrf.mxu0 }
 0x2a0   :  { %v342_v13 = vadd.f32 %v404_v10, %v341_v11 }
 0x2a1   :  { %v562_v15 = vpop.f32.mrf.mxu0 }
 0x2a2   :  { %578 = vtanh.f32 %v342_v13 }
 0x2af   :  { %v579_v24 = vpop.eup %578 }
 0x2b0   :  { %v363_v26 = vadd.f32 %v579_v24, %v362_v22 }
 0x2b2   :  { %v383_v27 = vsel %vm382_vm3, %v406_v25, %v363_v26 }
 0x2b3   :  { %384 = vst [vmem:[#allocation10] sm:$0xff] %v383_v27 }
 0x2b4   :  { %671 = shalt.err (!%p668_p10)
}
 0x2b5   :  { %394 = dma.vmem_to_hbm [thread:$0]  %s392_s3, 128, %s795_s4, [#allocation4]  }
 0x2b6   :  { %686 = dma.done.wait [#allocation4], 128  }
 0x2b7   :  { %687 = vsyncadd [#allocation4], 4294967168 }
 0x2b8   :  { %398 = vsyncpa [#allocation3], 1 }
 0x2b9   :  { %399 = vsyncpa [#allocation6], 1 }
 0x2ba   :  { %400 = vsyncpa [#allocation9], 1 }
 0x2bb   :  { %401 = vsyncpa [#allocation4], 1 }

</bundles_post_ra>
